<compile_context>
chip_gen: v7x
topology: tpu7x:2x2x1
jax: 0.10.0
libtpu: 0.0.40
codegen_flags: <defaults>
</compile_context>

<pallas_src>
import functools
import math

import jax
import jax.numpy as jnp
from jax import lax
from jax.experimental import pallas as pl
from jax.experimental.pallas import tpu as pltpu

D_MODEL = 128
D_FF = 2048
BN_EPS = 1e-5
LN_EPS = 1e-5
_INV_SQRT2 = 1.0 / math.sqrt(2.0)


def _gelu(h, approx):
    if approx:
        # tanh-approximate GELU: tanh runs on the EUP (separate VLIW slot from the VPU).
        c = 0.7978845608028654  # sqrt(2/pi)
        return 0.5 * h * (1.0 + jnp.tanh(c * (h + 0.044715 * h * h * h)))
    # Exact erf GELU (torch.nn.GELU() default semantics).
    return 0.5 * h * (1.0 + lax.erf(h * _INV_SQRT2))


# --------------------------------------------------------------------------- #
# Pass 1: per-ff-channel batch statistics of GELU(x @ W1), reduced over rows. #
# Grid: (kf, row_tiles); kf outer ("parallel"), rows inner (reduction).       #
# --------------------------------------------------------------------------- #
def _bn_stats_kernel(xmm_ref, w1_ref, sum_ref, sq_ref, *, approx_gelu):
    @pl.when(pl.program_id(1) == 0)
    def _():
        sum_ref[...] = jnp.zeros_like(sum_ref)
        sq_ref[...] = jnp.zeros_like(sq_ref)

    h = jnp.dot(xmm_ref[...], w1_ref[...], preferred_element_type=jnp.float32)
    h = _gelu(h, approx_gelu)
    sum_ref[...] += jnp.sum(h, axis=0, keepdims=True)      # [1, t_ff]
    sq_ref[...] += jnp.sum(h * h, axis=0, keepdims=True)   # [1, t_ff]


# --------------------------------------------------------------------------- #
# Pass 2: fc1 + GELU + (BN folded into W2) fc2 + residual + LayerNorm.        #
# Grid: (row_tiles, kf); rows outer ("parallel"), kf inner (reduction).       #
# fc2 accumulates directly into o_ref (f32, constant index over kf).          #
# --------------------------------------------------------------------------- #
def _ffn_apply_kernel(x_ref, xmm_ref, w1_ref, w2s_ref, shift_ref, lng_ref, lnb_ref,
                      o_ref, *, approx_gelu):
    k = pl.program_id(1)

    h = jnp.dot(xmm_ref[...], w1_ref[...], preferred_element_type=jnp.float32)
    h = _gelu(h, approx_gelu)
    # BN per-channel scale is pre-folded into w2s rows; BN shift enters as a
    # rank-1 [1, d_model] term in the epilogue.  Dropout(0.4) == identity (eval).
    contrib = jnp.dot(h.astype(w2s_ref.dtype), w2s_ref[...],
                      preferred_element_type=jnp.float32)

    @pl.when(k == 0)
    def _():
        o_ref[...] = contrib

    @pl.when(k > 0)
    def _():
        o_ref[...] += contrib

    @pl.when(k == pl.num_programs(1) - 1)
    def _():
        z = o_ref[...] + shift_ref[...] + x_ref[...]        # residual + rank-1 BN shift
        mu = jnp.mean(z, axis=-1, keepdims=True)
        d = z - mu
        v = jnp.mean(d * d, axis=-1, keepdims=True)
        zn = d * lax.rsqrt(v + LN_EPS)
        o_ref[...] = (zn * lng_ref[...] + lnb_ref[...]).astype(o_ref.dtype)


def _vmem_capacity_bytes():
    try:
        cap = getattr(pltpu.get_tpu_info(), "vmem_capacity_bytes", None)
        if cap:
            return int(cap)
    except Exception:
        pass
    return 64 << 20  # conservative fallback (v7x per-TensorCore VMEM)


def _select_tiles(n_rows, mm_itemsize, vmem_budget):
    """Row tile (>=256 multiple when N is large) and d_ff tile (capped at 1024 so
    there are always >=2 d_ff tiles and weight DMA overlaps compute)."""
    if n_rows <= 512:
        t_n = n_rows
    else:
        t_n = 0
        for cand in (512, 256, 128, 64, 32, 16):
            if n_rows % cand == 0:
                t_n = cand
                break
        if t_n == 0:
            raise ValueError("batch*seq > 512 must be divisible by 16")

    t_ff = 128
    for cand in (1024, 512, 256, 128):
        resident = 2 * t_n * D_MODEL * (4 + mm_itemsize + 4)      # x, x_mm, out (double-buffered)
        weights = 2 * 2 * D_MODEL * cand * mm_itemsize            # W1 + W2 tiles (double-buffered)
        temps = 2 * t_n * cand * 4                                # h + one f32 temp
        if resident + weights + temps + (2 << 20) <= vmem_budget:
            t_ff = cand
            break
    return t_n, t_ff


def poswise_ffn(x, w1, bn_gamma, bn_beta, w2, ln_gamma, ln_beta,
                *, matmul_dtype=jnp.bfloat16, approx_gelu=False):
    """x: [B, S, d_model] float32. Returns [B, S, d_model] float32."""
    B, S, D = x.shape
    N = B * S
    assert D == D_MODEL
    assert w1.shape == (D_MODEL, D_FF) and w2.shape == (D_FF, D_MODEL)
    assert N % 8 == 0, "batch*seq must be a multiple of 8 (f32 sublane)"

    mm_itemsize = jnp.dtype(matmul_dtype).itemsize
    cap = _vmem_capacity_bytes()
    vmem_budget = int(0.60 * cap)
    vmem_limit = int(0.70 * cap)
    t_n, t_ff = _select_tiles(N, mm_itemsize, vmem_budget)
    n_row_tiles = N // t_n
    kf = D_FF // t_ff

    x2 = x.reshape(N, D).astype(jnp.float32)
    xmm = x2.astype(matmul_dtype)          # cast once here, not per grid step
    w1c = w1.astype(matmul_dtype)

    # --- Pass 1: BN batch statistics -------------------------------------------------
    stats_cost = pl.CostEstimate(
        flops=2 * N * D_MODEL * D_FF + 5 * N * D_FF,
        transcendentals=N * D_FF,
        bytes_accessed=kf * N * D * mm_itemsize + D_MODEL * D_FF * mm_itemsize
        + 2 * 4 * D_FF,
    )
    bn_sum, bn_sq = pl.pallas_call(
        functools.partial(_bn_stats_kernel, approx_gelu=approx_gelu),
        out_shape=(jax.ShapeDtypeStruct((1, D_FF), jnp.float32),
                   jax.ShapeDtypeStruct((1, D_FF), jnp.float32)),
        grid_spec=pltpu.PrefetchScalarGridSpec(
            num_scalar_prefetch=0,
            grid=(kf, n_row_tiles),
            in_specs=[
                pl.BlockSpec((t_n, D), lambda k, i: (i, 0)),      # x (matmul dtype)
                pl.BlockSpec((D, t_ff), lambda k, i: (0, k)),     # W1 tile
            ],
            out_specs=[
                pl.BlockSpec((1, t_ff), lambda k, i: (0, k)),     # per-channel sum
                pl.BlockSpec((1, t_ff), lambda k, i: (0, k)),     # per-channel sum of squares
            ],
        ),
        compiler_params=pltpu.CompilerParams(
            dimension_semantics=("parallel", "arbitrary"),
            vmem_limit_bytes=vmem_limit,
        ),
        cost_estimate=stats_cost,
    )(xmm, w1c)

    # --- Fold BN into fc2 (tiny XLA ops between the two calls) -----------------------
    inv_n = 1.0 / float(N)
    mean = bn_sum * inv_n                                         # [1, d_ff]
    var = jnp.maximum(bn_sq * inv_n - mean * mean, 0.0)           # biased batch variance
    scale = bn_gamma.reshape(1, D_FF) * lax.rsqrt(var + BN_EPS)   # [1, d_ff]
    shift = bn_beta.reshape(1, D_FF) - mean * scale               # [1, d_ff]
    w2s = (w2 * scale.reshape(D_FF, 1)).astype(matmul_dtype)      # BN scale folded into W2 rows
    shift_row = (shift @ w2).astype(jnp.float32)                  # rank-1 shift term, [1, d_model]
    lng2 = ln_gamma.reshape(1, D).astype(jnp.float32)
    lnb2 = ln_beta.reshape(1, D).astype(jnp.float32)

    # --- Pass 2: apply ----------------------------------------------------------------
    apply_cost = pl.CostEstimate(
        flops=4 * N * D_MODEL * D_FF + 10 * N * D_MODEL,
        transcendentals=N * D_FF,
        bytes_accessed=N * D * (4 + mm_itemsize + 4)
        + 2 * D_MODEL * D_FF * mm_itemsize + 3 * 4 * D_MODEL,
    )
    out = pl.pallas_call(
        functools.partial(_ffn_apply_kernel, approx_gelu=approx_gelu),
        out_shape=jax.ShapeDtypeStruct((N, D), jnp.float32),
        grid_spec=pltpu.PrefetchScalarGridSpec(
            num_scalar_prefetch=0,
            grid=(n_row_tiles, kf),
            in_specs=[
                pl.BlockSpec((t_n, D), lambda i, k: (i, 0)),      # x f32 (residual)
                pl.BlockSpec((t_n, D), lambda i, k: (i, 0)),      # x in matmul dtype
                pl.BlockSpec((D, t_ff), lambda i, k: (0, k)),     # W1 tile
                pl.BlockSpec((t_ff, D), lambda i, k: (k, 0)),     # BN-scaled W2 tile
                pl.BlockSpec((1, D), lambda i, k: (0, 0)),        # rank-1 BN shift term
                pl.BlockSpec((1, D), lambda i, k: (0, 0)),        # LN gamma
                pl.BlockSpec((1, D), lambda i, k: (0, 0)),        # LN beta
            ],
            out_specs=pl.BlockSpec((t_n, D), lambda i, k: (i, 0)),
        ),
        compiler_params=pltpu.CompilerParams(
            dimension_semantics=("parallel", "arbitrary"),
            vmem_limit_bytes=vmem_limit,
        ),
        cost_estimate=apply_cost,
    )(x2, xmm, w1c, w2s, shift_row, lng2, lnb2)

    return out.reshape(B, S, D)


def _reference(x, w1, bn_gamma, bn_beta, w2, ln_gamma, ln_beta):
    B, S, D = x.shape
    h = jnp.einsum("bsd,df->bsf", x, w1)
    h = 0.5 * h * (1.0 + lax.erf(h / math.sqrt(2.0)))
    hf = h.reshape(B * S, D_FF)
    mean = jnp.mean(hf, axis=0, keepdims=True)
    var = jnp.mean((hf - mean) ** 2, axis=0, keepdims=True)
    hn = (hf - mean) / jnp.sqrt(var + BN_EPS) * bn_gamma[None, :] + bn_beta[None, :]
    y = (hn @ w2).reshape(B, S, D)
    z = y + x
    mu = jnp.mean(z, axis=-1, keepdims=True)
    v = jnp.mean((z - mu) ** 2, axis=-1, keepdims=True)
    return (z - mu) / jnp.sqrt(v + LN_EPS) * ln_gamma + ln_beta


if __name__ == "__main__":
    key = jax.random.PRNGKey(0)
    kx, k1, k2, kg, kb, kx2 = jax.random.split(key, 6)

    # ---- small shape: batch=2, seq=8, d_model=128 -------------------------------
    B, S = 2, 8
    x = jax.random.normal(kx, (B, S, D_MODEL), dtype=jnp.float32)
    w1 = jax.random.normal(k1, (D_MODEL, D_FF), dtype=jnp.float32) * (1.0 / math.sqrt(D_MODEL))
    w2 = jax.random.normal(k2, (D_FF, D_MODEL), dtype=jnp.float32) * (1.0 / math.sqrt(D_FF))
    # BatchNorm affine (non-trivial values exercise the W2 fold; defaults are ones/zeros).
    bn_gamma = 1.0 + 0.1 * jax.random.normal(kg, (D_FF,), dtype=jnp.float32)
    bn_beta = 0.1 * jax.random.normal(kb, (D_FF,), dtype=jnp.float32)
    # Fresh nn.LayerNorm(d_model) in forward -> gamma=1, beta=0.
    ln_gamma = jnp.ones((D_MODEL,), jnp.float32)
    ln_beta = jnp.zeros((D_MODEL,), jnp.float32)

    ref = _reference(x, w1, bn_gamma, bn_beta, w2, ln_gamma, ln_beta)

    # 1) f32-operand path: validates the restructured math (two-pass BN, W2 fold,
    #    rank-1 shift) against the f32 reference at tight tolerance.
    out_f32 = jax.block_until_ready(
        poswise_ffn(x, w1, bn_gamma, bn_beta, w2, ln_gamma, ln_beta,
                    matmul_dtype=jnp.float32))
    assert out_f32.shape == (B, S, D_MODEL)
    assert jnp.allclose(out_f32, ref, atol=2e-3, rtol=2e-3), "f32 path mismatch vs reference"

    # 2) bf16-MXU fast path (default): f32 accumulation, looser numerical check.
    out_bf16 = jax.block_until_ready(
        poswise_ffn(x, w1, bn_gamma, bn_beta, w2, ln_gamma, ln_beta,
                    matmul_dtype=jnp.bfloat16))
    assert out_bf16.shape == (B, S, D_MODEL)
    assert jnp.allclose(out_bf16, ref, atol=6e-2, rtol=6e-2), "bf16 path mismatch vs reference"

    # ---- medium shape exercising the row-tiled two-pass BatchNorm path ----------
    B2, S2 = 8, 128                        # N = 1024 -> 2 row tiles of 512, kf = 2
    x_m = jax.random.normal(kx2, (B2, S2, D_MODEL), dtype=jnp.float32)
    ref_m = _reference(x_m, w1, bn_gamma, bn_beta, w2, ln_gamma, ln_beta)
    out_m = jax.block_until_ready(
        poswise_ffn(x_m, w1, bn_gamma, bn_beta, w2, ln_gamma, ln_beta,
                    matmul_dtype=jnp.float32))
    assert out_m.shape == (B2, S2, D_MODEL)
    assert jnp.allclose(out_m, ref_m, atol=3e-3, rtol=3e-3), "row-tiled path mismatch vs reference"

    print("KERNEL_OK")
</pallas_src>

<mosaic_0001>
module attributes {stable_mosaic.version = 11 : i64} {
  func.func @_bn_stats_kernel(%arg0: i32, %arg1: i32, %arg2: memref<16x128xf32, #tpu.memory_space<vmem>>, %arg3: memref<128x1024xf32, #tpu.memory_space<vmem>>, %arg4: memref<1x1024xf32, #tpu.memory_space<vmem>>, %arg5: memref<1x1024xf32, #tpu.memory_space<vmem>>) attributes {dimension_semantics = [#tpu.dimension_semantics<parallel>, #tpu.dimension_semantics<arbitrary>], iteration_bounds = array<i64: 2, 1>, scalar_prefetch = 0 : i64, scratch_operands = 0 : i64, tpu.core_type = #tpu.core_type<tc>, window_params = [{transform_indices = @transform_0, window_bounds = array<i64: 16, 128>}, {transform_indices = @transform_1, window_bounds = array<i64: 128, 1024>}, {transform_indices = @transform_2, window_bounds = array<i64: 1, 1024>}, {transform_indices = @transform_3, window_bounds = array<i64: 1, 1024>}]} {
    %c0_i32 = arith.constant 0 : i32
    %0 = arith.cmpi eq, %arg1, %c0_i32 : i32
    %1 = arith.extui %0 : i1 to i32
    %c0_i32_0 = arith.constant 0 : i32
    %2 = arith.cmpi ne, %1, %c0_i32_0 : i32
    scf.if %2 {
      %cst_17 = arith.constant 0.000000e+00 : f32
      %25 = vector.broadcast %cst_17 : f32 to vector<1x1024xf32>
      %c0_18 = arith.constant 0 : index
      %c0_19 = arith.constant 0 : index
      %26 = vector.load %arg4[%c0_18, %c0_19] : memref<1x1024xf32, #tpu.memory_space<vmem>>, vector<1x1024xf32>
      tpu.vector_store %arg4[%c0_18, %c0_19], %25 {strides = array<i32>} : memref<1x1024xf32, #tpu.memory_space<vmem>>, vector<1x1024xf32>,
      %cst_20 = arith.constant 0.000000e+00 : f32
      %27 = vector.broadcast %cst_20 : f32 to vector<1x1024xf32>
      %c0_21 = arith.constant 0 : index
      %c0_22 = arith.constant 0 : index
      %28 = vector.load %arg5[%c0_21, %c0_22] : memref<1x1024xf32, #tpu.memory_space<vmem>>, vector<1x1024xf32>
      tpu.vector_store %arg5[%c0_21, %c0_22], %27 {strides = array<i32>} : memref<1x1024xf32, #tpu.memory_space<vmem>>, vector<1x1024xf32>,
    } else {
    }
    %c0 = arith.constant 0 : index
    %c0_1 = arith.constant 0 : index
    %3 = vector.load %arg2[%c0, %c0_1] : memref<16x128xf32, #tpu.memory_space<vmem>>, vector<16x128xf32>
    %c0_2 = arith.constant 0 : index
    %c0_3 = arith.constant 0 : index
    %4 = vector.load %arg3[%c0_2, %c0_3] : memref<128x1024xf32, #tpu.memory_space<vmem>>, vector<128x1024xf32>
    %cst = arith.constant dense<0.000000e+00> : vector<16x1024xf32>
    %5 = tpu.matmul %3, %4, %cst {dimension_numbers = #tpu.dot_dimension_numbers<[1], [0], [0], [1], [0, 0, 1, 1], [], []>} : vector<16x128xf32>, vector<128x1024xf32>, vector<16x1024xf32> -> vector<16x1024xf32>
    %cst_4 = arith.constant 5.000000e-01 : f32
    %6 = vector.broadcast %cst_4 : f32 to vector<16x1024xf32>
    %7 = arith.mulf %6, %5 : vector<16x1024xf32>
    %cst_5 = arith.constant 0.707106769 : f32
    %8 = vector.broadcast %cst_5 : f32 to vector<16x1024xf32>
    %9 = arith.mulf %5, %8 : vector<16x1024xf32>
    %10 = math.erf %9 : vector<16x1024xf32>
    %cst_6 = arith.constant 1.000000e+00 : f32
    %11 = vector.broadcast %cst_6 : f32 to vector<16x1024xf32>
    %12 = arith.addf %11, %10 : vector<16x1024xf32>
    %13 = arith.mulf %7, %12 : vector<16x1024xf32>
    %c0_7 = arith.constant 0 : index
    %c0_8 = arith.constant 0 : index
    %14 = vector.load %arg4[%c0_7, %c0_8] : memref<1x1024xf32, #tpu.memory_space<vmem>>, vector<1x1024xf32>
    %cst_9 = arith.constant dense<0.000000e+00> : vector<1024xf32>
    %15 = vector.multi_reduction <add>, %13, %cst_9 [0] : vector<16x1024xf32> to vector<1024xf32>
    %16 = vector.shape_cast %15 : vector<1024xf32> to vector<1x1024xf32>
    %17 = arith.addf %14, %16 : vector<1x1024xf32>
    %c0_10 = arith.constant 0 : index
    %c0_11 = arith.constant 0 : index
    %18 = vector.load %arg4[%c0_10, %c0_11] : memref<1x1024xf32, #tpu.memory_space<vmem>>, vector<1x1024xf32>
    tpu.vector_store %arg4[%c0_10, %c0_11], %17 {strides = array<i32>} : memref<1x1024xf32, #tpu.memory_space<vmem>>, vector<1x1024xf32>,
    %c0_12 = arith.constant 0 : index
    %c0_13 = arith.constant 0 : index
    %19 = vector.load %arg5[%c0_12, %c0_13] : memref<1x1024xf32, #tpu.memory_space<vmem>>, vector<1x1024xf32>
    %20 = arith.mulf %13, %13 : vector<16x1024xf32>
    %cst_14 = arith.constant dense<0.000000e+00> : vector<1024xf32>
    %21 = vector.multi_reduction <add>, %20, %cst_14 [0] : vector<16x1024xf32> to vector<1024xf32>
    %22 = vector.shape_cast %21 : vector<1024xf32> to vector<1x1024xf32>
    %23 = arith.addf %19, %22 : vector<1x1024xf32>
    %c0_15 = arith.constant 0 : index
    %c0_16 = arith.constant 0 : index
    %24 = vector.load %arg5[%c0_15, %c0_16] : memref<1x1024xf32, #tpu.memory_space<vmem>>, vector<1x1024xf32>
    tpu.vector_store %arg5[%c0_15, %c0_16], %23 {strides = array<i32>} : memref<1x1024xf32, #tpu.memory_space<vmem>>, vector<1x1024xf32>,
    return
  }
  func.func @transform_0(%arg0: i32, %arg1: i32) -> (i32, i32) {
    %c0_i32 = arith.constant 0 : i32
    %c0_i32_0 = arith.constant 0 : i32
    return %arg1, %c0_i32 : i32, i32
  }
  func.func @transform_1(%arg0: i32, %arg1: i32) -> (i32, i32) {
    %c0_i32 = arith.constant 0 : i32
    %c0_i32_0 = arith.constant 0 : i32
    return %c0_i32, %arg0 : i32, i32
  }
  func.func @transform_2(%arg0: i32, %arg1: i32) -> (i32, i32) {
    %c0_i32 = arith.constant 0 : i32
    %c0_i32_0 = arith.constant 0 : i32
    return %c0_i32, %arg0 : i32, i32
  }
  func.func @transform_3(%arg0: i32, %arg1: i32) -> (i32, i32) {
    %c0_i32 = arith.constant 0 : i32
    %c0_i32_0 = arith.constant 0 : i32
    return %c0_i32, %arg0 : i32, i32
  }
}

</mosaic_0001>

<bundles_post_ra>
// kernel: tpu_custom_call.1
= control target key start
LH: loop header
LB: loop body
LE: loop exit
PB: predicated region body
PF: predicated region fallthrough
CT: control target
= control target key end

     0   :  { %9 = vsyncpa [#allocation3], 0  ;;  %s2091_s0 = inlined_call_operand.hbm [shape: f32[16,128], index: 0, kind: input, shape index: {}]   ;;  %s2092_s1 = inlined_call_operand.hbm [shape: f32[128,2048], index: 1, kind: input, shape index: {}]   ;;  %s2093_s2 = inlined_call_operand.hbm [shape: f32[1,2048], index: 2, kind: output, shape index: {0}]   ;;  %s2094_s3 = inlined_call_operand.hbm [shape: f32[1,2048], index: 3, kind: output, shape index: {1}]  }
   0x1   :  { %10 = vsyncpa [#allocation6], 0 }
   0x2   :  { %12 = vsyncpa [#allocation6 + $0x1], 0 }
   0x3   :  { %13 = vsyncpa [#allocation4], 0 }
   0x4   :  { %15 = vsyncpa [#allocation4 + $0x1], 0 }
   0x5   :  { %16 = vsyncpa [#allocation9], 0 }
   0x6   :  { %18 = vsyncpa [#allocation9 + $0x1], 0  ;;  %s1649_s12 = smov 0   ;;  %s1651_s13 = smov 0  }
   0x7   :  { %s1653_s14 = smov 0   ;;  %s1655_s15 = smov 0  }
   0x8   :  { %s1657_s16 = smov 0   ;;  %s1659_s17 = smov 0  }
   0x9 LB: > { %s1171_s18 = sadd.s32 4294967295, %s1616_s17   ;;  %s1172_s19 = sadd.s32 4294967294, %s1616_s17   ;;  %s1616_s17 = sphi %s1659_s17, %s24_s17   ;;  %s1612_s16 = sphi %s1657_s16, %s2120_s16   ;;  %s1608_s15 = sphi %s1655_s15, %s2119_s15   ;;  %s1604_s14 = sphi %s1653_s14, %s2118_s14   ;;  %s1600_s13 = sphi %s1651_s13, %s2117_s13   ;;  %s1596_s12 = sphi %s1649_s12, %s2116_s12  }
   0xa   : > { %p76_p0 = scmp.ne.s32.totalorder %s1604_s14, %s1600_s13  ;;  %p77_p1 = scmp.eq.s32.totalorder %s1616_s17, 0 }
   0xb   : > { %p82_p2 = scmp.ne.s32.totalorder %s1600_s13, %s1596_s12  ;;  %p1686_p3 = scmp.eq.s32.totalorder %s1171_s18, 0 }
   0xc   : > { %p1690_p4 = por %p77_p1, %p76_p0  ;;  %p106_p5 = scmp.eq.s32.totalorder %s1171_s18, 1 }
   0xd   : > { %s2101_s20 = scalar_select %p1686_p3, 1, 0 }
   0xe   : > { %p1696_p6 = por %p1686_p3, %p82_p2  ;;  %p112_p7 = scmp.eq.s32.totalorder %s1172_s19, 1 }
   0xf   : > { %p1700_p8 = por %p106_p5, %p76_p0  ;;  %p1173_p9 = scmp.ge.s32.totalorder %s1616_s17, 1 }
  0x10   : > { %s2103_s22 = scalar_select %p1696_p6, 1, 0 }
  0x11   : > { %s2104_s23 = scalar_select %p1700_p8, 1, 0 }
  0x12   : > { %p1705_p10 = por %p112_p7, %p82_p2  ;;  %p145_p11 = scmp.lt.s32.totalorder %s1616_s17, 3 }
  0x13   : > { %s1618_s26 = smov [#allocation2]   ;;  %p1349_p1 = scmp.lt.s32.totalorder %s1616_s17, 2 }
  0x14   : > { %s2105_s24 = scalar_select %p1705_p10, 1, 0 }
  0x15   : > { %p1710_p12 = pnand %p1173_p9, %p145_p11  ;;  %s160_s27 = sshll.u32 %s1618_s26, 4  ;;  %s1714_s27 = int_to_ptr.vmem [resolvable:$true] %s160_s27 }
  0x16   : > { %p1728_p2 = pnand %p1349_p1, %p1690_p4  ;;  %s36_s30 = sadd.s32 1, %s1612_s16 }
  0x17   : > { %s2106_s25 = scalar_select %p1710_p12, 1, 0 }
  0x18   : > { %p1333_p13 = pneg %p1710_p12  ;;  %s1440_s6 = scalar_lea.hbm %s2091_s0, 256 }
  0x19   : > { %s2108_s29 = scalar_select %p1728_p2, 1, 0 }
  0x1a   : > { %p1722_p5 = pnand %p1333_p13, %p1686_p3  ;;  %p1441_p7 = scmp.ne.s32.totalorder %s2091_s0, %s1440_s6 }
  0x1b   : > { %p1447_p4 = scmp.lt.u32.totalorder %s1440_s6, %s2091_s0 }
  0x1c   : > { %p1442_p9 = pneg %p1722_p5 }
  0x1e   : > { %p1443_p11 = pnand %p1442_p9, %p1441_p7 }
  0x20   : > { %p1444_p13 = pneg %p1443_p11 }
  0x22   : > { %p1449_p1 = pnand %p1447_p4, %p1444_p13 }
  0x24   : > { %1452 = shalt.err (!%p1449_p1)
}
  0x25   : > { %s1453_s11 = scalar_lea.vmem %s1714_s27, 256  ;;  %p1461_p6 = scmp.lt.s32.totalorder %s1714_s27, %s1714_s27 }
  0x26   : > { %p1454_p0 = scmp.ne.s32.totalorder %s1714_s27, %s1453_s11  ;;  %p1462_p3 = scmp.lt.s32.totalorder %s1453_s11, %s1453_s11 }
  0x28   : > { %p1456_p10 = pnand %p1454_p0, %p1442_p9  ;;  %p1463_p12 = por %p1462_p3, %p1461_p6 }
  0x2a   : > { %p1457_p8 = pneg %p1456_p10 }
  0x2c   : > { %p1464_p2 = pnand %p1463_p12, %p1457_p8 }
  0x2e   : > { %1467 = shalt.err (!%p1464_p2)
}
  0x2f   : > { %s1619_s18 = smov 128   ;;  %s1620_s19 = smov 8  }
  0x30   : > { %1336 = dma.hbm_to_vmem [thread:$0]  (!%p1722_p5), %s2091_s0, 256, %s1714_s27, [#allocation3], %s1619_s18, %s1619_s18, %s1620_s19  }
  0x31   : > { %p38_p10 = scmp.ge.s32.totalorder %s36_s30, 2  ;;  %s69_s4 = sadd.s32 1, %s1604_s14 }
  0x32   : > { %s174_s5 = sand.u32 1, %s1604_s14   ;;  %s1192_s8 = sshll.u32 %s1612_s16, 10 }
  0x33   : > { %s2122_s30 = smov (%p38_p10, %s36_s30), 0  ;;  %s1176_s6 = sshll.u32 %s174_s5, 10 }
  0x34   : > { %s66_s7 = ssub.s32 %s1612_s16, %s2122_s30  ;;  %s1764_s28 = scalar_lea.hbm %s2092_s1, %s1192_s8 }
  0x35   : > { %p67_p3 = scmp.eq.s32.totalorder %s66_s7, 0  ;;  %s178_s27 = scalar_lea.vmem [#allocation5], %s1176_s6 }
  0x36   : > { %s185_s11 = sshll.u32 %s178_s27, 4  ;;  %s1771_s19 = scalar_lea.sflag [#allocation6], %s174_s5  ;;  %s1769_s11 = int_to_ptr.vmem [resolvable:$true] %s185_s11 }
  0x37   : > { %s1767_s18 = scalar_select %p67_p3, %s1604_s14, %s69_s4  }
  0x38   : > { %s1468_s21 = scalar_lea.hbm %s1764_s28, 16384  ;;  %p2109_p8 = scmp.ne.s32.totalorder %s2108_s29, 0 }
  0x39   : > { %p1469_p6 = scmp.ne.s32.totalorder %s1764_s28, %s1468_s21  ;;  %s1473_s8 = scalar_lea.hbm %s2092_s1, 32768 }
  0x3a   : > { %p1470_p12 = pneg %p2109_p8  ;;  %p1474_p2 = scmp.lt.u32.totalorder %s1764_s28, %s2092_s1 }
  0x3b   : > { %p1475_p7 = scmp.lt.u32.totalorder %s1473_s8, %s1468_s21  ;;  %p1477_p11 = scmp.lt.u32.totalorder %s1468_s21, %s1764_s28 }
  0x3c   : > { %p1471_p0 = pnand %p1470_p12, %p1469_p6 }
  0x3d   : > { %p1476_p9 = por %p1475_p7, %p1474_p2 }
  0x3e   : > { %p1472_p5 = pneg %p1471_p0 }
  0x3f   : > { %p1478_p13 = por %p1477_p11, %p1476_p9 }
  0x41   : > { %p1479_p4 = pnand %p1478_p13, %p1472_p5 }
  0x43   : > { %1482 = shalt.err (!%p1479_p4)
}
  0x44   : > { %s1483_s4 = scalar_lea.vmem %s1769_s11, 16384  ;;  %s1621_s5 = smov [#allocation5]  }
  0x45   : > { %p1484_p1 = scmp.ne.s32.totalorder %s1769_s11, %s1483_s4  ;;  %s1488_s10 = sshll.u32 %s1621_s5, 4  ;;  %s1489_s10 = int_to_ptr.vmem [resolvable:$false] %s1488_s10 }
  0x46   : > { %s1490_s27 = scalar_lea.vmem %s1489_s10, 32768  ;;  %p1491_p6 = scmp.lt.s32.totalorder %s1769_s11, %s1489_s10 }
  0x47   : > { %p1486_p10 = pnand %p1484_p1, %p1470_p12  ;;  %p1492_p0 = scmp.lt.s32.totalorder %s1490_s27, %s1483_s4 }
  0x49   : > { %p1487_p3 = pneg %p1486_p10  ;;  %p1493_p2 = por %p1492_p0, %p1491_p6 }
  0x4b   : > { %p1494_p7 = pnand %p1493_p2, %p1487_p3 }
  0x4d   : > { %1497 = shalt.err (!%p1494_p7)
}
  0x4e   : > { %s1622_s21 = smov 2048   ;;  %s1623_s26 = smov 1024  }
  0x4f   : > { %s1624_s7 = smov 64   ;;  %p2110_p12 = scmp.ne.s32.totalorder %s2106_s25, 0 }
  0x50   : > { %1340 = dma.hbm_to_vmem [thread:$0]  (!%p2109_p8), %s1764_s28, 16384, %s1769_s11, %s1771_s19, %s1622_s21, %s1623_s26, %s1624_s7  }
  0x51   : > { %197 = sbr.rel (%p2110_p12) target bundleno = 462 (0x1ce), region = 28  ;;  %p2111_p5 = scmp.ne.s32.totalorder (!%p2110_p12), %s2101_s20, 0 }
  0x58   : > { %1579 = dma.done.wait (%p2111_p5), [#allocation3], 256  }
  0x59   : > { %1581 = vsyncadd (%p2111_p5), [#allocation3], 4294967040  ;;  %s1806_s8 = sand.u32 1, %s1600_s13   ;;  %p2112_p8 = scmp.ne.s32.totalorder %s2103_s22, 0 }
  0x5a   : > { %s1181_s6 = sshll.u32 %s1806_s8, 10  ;;  %s204_s9 = scalar_lea.sflag [#allocation6], %s1806_s8 }
  0x5b   : > { %s1810_s4 = scalar_lea.vmem [#allocation5], %s1181_s6 }
  0x5c   : > { %1583 = dma.done.wait (%p2112_p8), %s204_s9, 16384  }
  0x5d   : > { %1585 = vsyncadd (%p2112_p8), %s204_s9, 4294950912  ;;  %v1625_v0 = vmov 0.0   ;;  %v248_v1 = vld [vmem:[%s1810_s4 + $0x8] sm:$0xff]  ;;  %v250_v3 = vld [vmem:[%s1810_s4 + $0x18] sm:$0xff]  ;;  %s1182_s20 = sshll.u32 %s1806_s8, 3  ;;  %s1193_s22 = sshll.u32 %s1608_s15, 7 }
  0x5e   : > { %439 = vmatprep.mubr.f32.mxu0 %v1625_v0  ;;  %516 = vmatprep.mubr.f32.mxu1 %v1625_v0  ;;  %v256_v2 = vld [vmem:[%s1810_s4 + $0x48] sm:$0xff]  ;;  %v258_v5 = vld [vmem:[%s1810_s4 + $0x58] sm:$0xff]  ;;  %v247_v6 = vld [vmem:[%s1810_s4] sm:$0xff]  ;;  %s227_s25 = scalar_lea.vmem [#allocation7], %s1182_s20  ;;  %s2006_s28 = scalar_lea.vmem [#allocation8], %s1182_s20 }
  0x5f   : > { %v1195_v4 = vpack.c.bf16 %v256_v2, %v248_v1  ;;  %v255_v7 = vld [vmem:[%s1810_s4 + $0x40] sm:$0xff]  ;;  %v1227_v8 = vpack.c.bf16 %v258_v5, %v250_v3  ;;  %v249_v10 = vld [vmem:[%s1810_s4 + $0x10] sm:$0xff]  ;;  %v264_v12 = vld [vmem:[%s1810_s4 + $0x88] sm:$0xff]  ;;  %s1033_s29 = sshll.u32 %s227_s25, 4  ;;  %s1047_s11 = sshll.u32 %s2006_s28, 4  ;;  %s2014_s29 = int_to_ptr.vmem [resolvable:$true] %s1033_s29  ;;  %s2021_s11 = int_to_ptr.vmem [resolvable:$true] %s1047_s11 }
  0x60   : > { %v1197_v9 = vpack.c.bf16 %v255_v7, %v247_v6  ;;  %v257_v11 = vld [vmem:[%s1810_s4 + $0x50] sm:$0xff]  ;;  %v272_v14 = vld [vmem:[%s1810_s4 + $0xc8] sm:$0xff]  ;;  %v266_v15 = vld [vmem:[%s1810_s4 + $0x98] sm:$0xff]  ;;  %s2012_s10 = scalar_lea.hbm %s2093_s2, %s1193_s22  ;;  %s2019_s21 = scalar_lea.hbm %s2094_s3, %s1193_s22 }
  0x61   : > { %1196 = vmatprep.subr.bf16.mxu0 %v1195_v4  ;;  %v1229_v13 = vpack.c.bf16 %v257_v11, %v249_v10  ;;  %v274_v16 = vld [vmem:[%s1810_s4 + $0xd8] sm:$0xff]  ;;  %1228 = vmatprep.subr.bf16.mxu1 %v1227_v8  ;;  %v1199_v17 = vpack.c.bf16 %v272_v14, %v264_v12  ;;  %v263_v19 = vld [vmem:[%s1810_s4 + $0x80] sm:$0xff]  ;;  %v265_v21 = vld [vmem:[%s1810_s4 + $0x90] sm:$0xff]  ;;  %s1014_s26 = scalar_lea.sflag [#allocation4], %s1806_s8  ;;  %s1498_s7 = scalar_lea.vmem %s2014_s29, 128 }
  0x62   : > { %1198 = vmatpush1.bf16.msra.mxu0 %v1197_v9  ;;  %v1231_v18 = vpack.c.bf16 %v274_v16, %v266_v15  ;;  %v271_v20 = vld [vmem:[%s1810_s4 + $0xc0] sm:$0xff]  ;;  %v273_v23 = vld [vmem:[%s1810_s4 + $0xd0] sm:$0xff]  ;;  %v280_v24 = vld [vmem:[%s1810_s4 + $0x108] sm:$0xff]  ;;  %p1499_p9 = scmp.ne.s32.totalorder %s2014_s29, %s1498_s7  ;;  %p2113_p11 = scmp.ne.s32.totalorder %s2104_s23, 0 }
  0x63   : > { %1230 = vmatpush1.bf16.msra.mxu1 %v1229_v13  ;;  %v1201_v22 = vpack.c.bf16 %v271_v20, %v263_v19  ;;  %v288_v25 = vld [vmem:[%s1810_s4 + $0x148] sm:$0xff]  ;;  %1200 = vmatprep.subr.bf16.mxu0 %v1199_v17  ;;  %v1233_v26 = vpack.c.bf16 %v273_v23, %v265_v21  ;;  %v282_v28 = vld [vmem:[%s1810_s4 + $0x118] sm:$0xff]  ;;  %v279_v30 = vld [vmem:[%s1810_s4 + $0x100] sm:$0xff]  ;;  %s1627_s6 = smov [#allocation7]  }
  0x64   : > { %1232 = vmatprep.subr.bf16.mxu1 %v1231_v18  ;;  %v1203_v27 = vpack.c.bf16 %v288_v25, %v280_v24  ;;  %v290_v29 = vld [vmem:[%s1810_s4 + $0x158] sm:$0xff]  ;;  %v287_v32 = vld [vmem:[%s1810_s4 + $0x140] sm:$0xff]  ;;  %v281_v33 = vld [vmem:[%s1810_s4 + $0x110] sm:$0xff]  ;;  %p1500_p13 = pnand %p1499_p9, %p2113_p11  ;;  %s1502_s9 = sshll.u32 %s1627_s6, 4  ;;  %s1503_s9 = int_to_ptr.vmem [resolvable:$false] %s1502_s9 }
  0x65   : > { %v1235_v31 = vpack.c.bf16 %v290_v29, %v282_v28  ;;  %v289_v34 = vld [vmem:[%s1810_s4 + $0x150] sm:$0xff]  ;;  %v1205_v35 = vpack.c.bf16 %v287_v32, %v279_v30  ;;  %v296_v36 = vld [vmem:[%s1810_s4 + $0x188] sm:$0xff]  ;;  %v298_v38 = vld [vmem:[%s1810_s4 + $0x198] sm:$0xff]  ;;  %p1505_p1 = scmp.lt.s32.totalorder %s2014_s29, %s1503_s9 }
  0x66   : > { %1202 = vmatpush1.bf16.msra.mxu0 %v1201_v22  ;;  %v304_v37 = vld [vmem:[%s1810_s4 + $0x1c8] sm:$0xff]  ;;  %v1237_v39 = vpack.c.bf16 %v289_v34, %v281_v33  ;;  %v306_v41 = vld [vmem:[%s1810_s4 + $0x1d8] sm:$0xff]  ;;  %v295_v42 = vld [vmem:[%s1810_s4 + $0x180] sm:$0xff]  ;;  %p1501_p4 = pneg %p1500_p13 }
  0x67   : > { %1234 = vmatpush1.bf16.msra.mxu1 %v1233_v26  ;;  %1204 = vmatprep.subr.bf16.mxu0 %v1203_v27  ;;  %v1207_v40 = vpack.c.bf16 %v304_v37, %v296_v36  ;;  %v303_v43 = vld [vmem:[%s1810_s4 + $0x1c0] sm:$0xff]  ;;  %v1239_v44 = vpack.c.bf16 %v306_v41, %v298_v38  ;;  %v297_v45 = vld [vmem:[%s1810_s4 + $0x190] sm:$0xff]  ;;  %v312_v47 = vld [vmem:[%s1810_s4 + $0x208] sm:$0xff] }
  0x68   : > { %1236 = vmatprep.subr.bf16.mxu1 %v1235_v31  ;;  %v305_v46 = vld [vmem:[%s1810_s4 + $0x1d0] sm:$0xff]  ;;  %v320_v48 = vld [vmem:[%s1810_s4 + $0x248] sm:$0xff]  ;;  %v314_v49 = vld [vmem:[%s1810_s4 + $0x218] sm:$0xff]  ;;  %v1209_v51 = vpack.c.bf16 %v303_v43, %v295_v42 }
  0x69   : > { %v322_v50 = vld [vmem:[%s1810_s4 + $0x258] sm:$0xff]  ;;  %v1241_v52 = vpack.c.bf16 %v305_v46, %v297_v45  ;;  %v1211_v53 = vpack.c.bf16 %v320_v48, %v312_v47  ;;  %v311_v54 = vld [vmem:[%s1810_s4 + $0x200] sm:$0xff]  ;;  %v313_v56 = vld [vmem:[%s1810_s4 + $0x210] sm:$0xff] }
  0x6a   : > { %1206 = vmatpush1.bf16.msra.mxu0 %v1205_v35  ;;  %v319_v55 = vld [vmem:[%s1810_s4 + $0x240] sm:$0xff]  ;;  %v1243_v57 = vpack.c.bf16 %v322_v50, %v314_v49  ;;  %v321_v58 = vld [vmem:[%s1810_s4 + $0x250] sm:$0xff]  ;;  %v328_v59 = vld [vmem:[%s1810_s4 + $0x288] sm:$0xff] }
  0x6b   : > { %1238 = vmatpush1.bf16.msra.mxu1 %v1237_v39  ;;  %1208 = vmatprep.subr.bf16.mxu0 %v1207_v40  ;;  %v336_v60 = vld [vmem:[%s1810_s4 + $0x2c8] sm:$0xff]  ;;  %v330_v61 = vld [vmem:[%s1810_s4 + $0x298] sm:$0xff]  ;;  %v1213_v63 = vpack.c.bf16 %v319_v55, %v311_v54  ;;  %v1245_v1 = vpack.c.bf16 %v321_v58, %v313_v56  ;;  %v327_v3 = vld [vmem:[%s1810_s4 + $0x280] sm:$0xff] }
  0x6c   : > { %1240 = vmatprep.subr.bf16.mxu1 %v1239_v44  ;;  %v338_v62 = vld [vmem:[%s1810_s4 + $0x2d8] sm:$0xff]  ;;  %v1215_v2 = vpack.c.bf16 %v336_v60, %v328_v59  ;;  %v335_v4 = vld [vmem:[%s1810_s4 + $0x2c0] sm:$0xff]  ;;  %v329_v5 = vld [vmem:[%s1810_s4 + $0x290] sm:$0xff] }
  0x6d   : > { %v1247_v6 = vpack.c.bf16 %v338_v62, %v330_v61  ;;  %v337_v7 = vld [vmem:[%s1810_s4 + $0x2d0] sm:$0xff]  ;;  %v344_v8 = vld [vmem:[%s1810_s4 + $0x308] sm:$0xff]  ;;  %v346_v10 = vld [vmem:[%s1810_s4 + $0x318] sm:$0xff]  ;;  %v1217_v12 = vpack.c.bf16 %v335_v4, %v327_v3 }
  0x6e   : > { %1210 = vmatpush1.bf16.msra.mxu0 %v1209_v51  ;;  %v352_v9 = vld [vmem:[%s1810_s4 + $0x348] sm:$0xff]  ;;  %v354_v11 = vld [vmem:[%s1810_s4 + $0x358] sm:$0xff]  ;;  %v1249_v13 = vpack.c.bf16 %v337_v7, %v329_v5  ;;  %v343_v15 = vld [vmem:[%s1810_s4 + $0x300] sm:$0xff] }
  0x6f   : > { %1242 = vmatpush1.bf16.msra.mxu1 %v1241_v52  ;;  %1212 = vmatprep.subr.bf16.mxu0 %v1211_v53  ;;  %v1219_v14 = vpack.c.bf16 %v352_v9, %v344_v8  ;;  %v351_v16 = vld [vmem:[%s1810_s4 + $0x340] sm:$0xff]  ;;  %v345_v17 = vld [vmem:[%s1810_s4 + $0x310] sm:$0xff]  ;;  %v1251_v18 = vpack.c.bf16 %v354_v11, %v346_v10  ;;  %v360_v20 = vld [vmem:[%s1810_s4 + $0x388] sm:$0xff] }
  0x70   : > { %1244 = vmatprep.subr.bf16.mxu1 %v1243_v57  ;;  %v353_v19 = vld [vmem:[%s1810_s4 + $0x350] sm:$0xff]  ;;  %v368_v21 = vld [vmem:[%s1810_s4 + $0x3c8] sm:$0xff]  ;;  %v362_v22 = vld [vmem:[%s1810_s4 + $0x398] sm:$0xff]  ;;  %v1221_v24 = vpack.c.bf16 %v351_v16, %v343_v15 }
  0x71   : > { %v370_v23 = vld [vmem:[%s1810_s4 + $0x3d8] sm:$0xff]  ;;  %v1253_v25 = vpack.c.bf16 %v353_v19, %v345_v17  ;;  %v1223_v26 = vpack.c.bf16 %v368_v21, %v360_v20  ;;  %v359_v27 = vld [vmem:[%s1810_s4 + $0x380] sm:$0xff]  ;;  %v361_v29 = vld [vmem:[%s1810_s4 + $0x390] sm:$0xff] }
  0x72   : > { %1214 = vmatpush1.bf16.msra.mxu0 %v1213_v63  ;;  %v367_v28 = vld [vmem:[%s1810_s4 + $0x3c0] sm:$0xff]  ;;  %v1255_v30 = vpack.c.bf16 %v370_v23, %v362_v22  ;;  %v369_v31 = vld [vmem:[%s1810_s4 + $0x3d0] sm:$0xff]  ;;  %v252_v32 = vld [vmem:[%s1810_s4 + $0x28] sm:$0xff] }
  0x73   : > { %1246 = vmatpush1.bf16.msra.mxu1 %v1245_v1  ;;  %1216 = vmatprep.subr.bf16.mxu0 %v1215_v2  ;;  %v260_v33 = vld [vmem:[%s1810_s4 + $0x68] sm:$0xff]  ;;  %v254_v34 = vld [vmem:[%s1810_s4 + $0x38] sm:$0xff]  ;;  %v1225_v36 = vpack.c.bf16 %v367_v28, %v359_v27  ;;  %v1257_v37 = vpack.c.bf16 %v369_v31, %v361_v29  ;;  %v251_v39 = vld [vmem:[%s1810_s4 + $0x20] sm:$0xff] }
  0x74   : > { %1248 = vmatprep.subr.bf16.mxu1 %v1247_v6  ;;  %v262_v35 = vld [vmem:[%s1810_s4 + $0x78] sm:$0xff]  ;;  %v1259_v38 = vpack.c.bf16 %v260_v33, %v252_v32  ;;  %v259_v40 = vld [vmem:[%s1810_s4 + $0x60] sm:$0xff]  ;;  %v253_v42 = vld [vmem:[%s1810_s4 + $0x30] sm:$0xff] }
  0x75   : > { %v1291_v41 = vpack.c.bf16 %v262_v35, %v254_v34  ;;  %v261_v43 = vld [vmem:[%s1810_s4 + $0x70] sm:$0xff]  ;;  %v268_v44 = vld [vmem:[%s1810_s4 + $0xa8] sm:$0xff]  ;;  %v1261_v47 = vpack.c.bf16 %v259_v40, %v251_v39  ;;  %v270_v48 = vld [vmem:[%s1810_s4 + $0xb8] sm:$0xff] }
  0x76   : > { %1218 = vmatpush1.bf16.msra.mxu0 %v1217_v12  ;;  %v276_v45 = vld [vmem:[%s1810_s4 + $0xe8] sm:$0xff]  ;;  %v1892_v46 = vld [vmem:[#allocation2] sm:$0xff]  ;;  %v278_v49 = vld [vmem:[%s1810_s4 + $0xf8] sm:$0xff]  ;;  %v1293_v50 = vpack.c.bf16 %v261_v43, %v253_v42 }
  0x77   : > { %1250 = vmatpush1.bf16.msra.mxu1 %v1249_v13  ;;  %1220 = vmatprep.subr.bf16.mxu0 %v1219_v14  ;;  %v267_v51 = vld [vmem:[%s1810_s4 + $0xa0] sm:$0xff]  ;;  %v269_v53 = vld [vmem:[%s1810_s4 + $0xb0] sm:$0xff]  ;;  %v1263_v54 = vpack.c.bf16 %v276_v45, %v268_v44  ;;  %v284_v56 = vld [vmem:[%s1810_s4 + $0x128] sm:$0xff]  ;;  %v1295_v58 = vpack.c.bf16 %v278_v49, %v270_v48 }
  0x78   : > { %1252 = vmatprep.subr.bf16.mxu1 %v1251_v18  ;;  %v275_v52 = vld [vmem:[%s1810_s4 + $0xe0] sm:$0xff]  ;;  %v277_v55 = vld [vmem:[%s1810_s4 + $0xf0] sm:$0xff]  ;;  %v292_v57 = vld [vmem:[%s1810_s4 + $0x168] sm:$0xff] }
  0x79   : > { %v286_v59 = vld [vmem:[%s1810_s4 + $0x138] sm:$0xff]  ;;  %v1265_v62 = vpack.c.bf16 %v275_v52, %v267_v51  ;;  %v1297_v63 = vpack.c.bf16 %v277_v55, %v269_v53  ;;  %v1267_v1 = vpack.c.bf16 %v292_v57, %v284_v56  ;;  %v283_v2 = vld [vmem:[%s1810_s4 + $0x120] sm:$0xff]  ;;  %v285_v4 = vld [vmem:[%s1810_s4 + $0x130] sm:$0xff] }
  0x7a   : > { %1222 = vmatpush1.bf16.msra.mxu0 %v1221_v24  ;;  %v294_v60 = vld [vmem:[%s1810_s4 + $0x178] sm:$0xff]  ;;  %v291_v3 = vld [vmem:[%s1810_s4 + $0x160] sm:$0xff]  ;;  %v293_v6 = vld [vmem:[%s1810_s4 + $0x170] sm:$0xff] }
  0x7b   : > { %1254 = vmatpush1.bf16.msra.mxu1 %v1253_v25  ;;  %1224 = vmatprep.subr.bf16.mxu0 %v1223_v26  ;;  %v1906_v61 = vld [vmem:[#allocation2 + $0x8] sm:$0xff]  ;;  %v1299_v5 = vpack.c.bf16 %v294_v60, %v286_v59  ;;  %v300_v7 = vld [vmem:[%s1810_s4 + $0x1a8] sm:$0xff]  ;;  %v1269_v11 = vpack.c.bf16 %v291_v3, %v283_v2  ;;  %v1301_v12 = vpack.c.bf16 %v293_v6, %v285_v4  ;;  %v299_v14 = vld [vmem:[%s1810_s4 + $0x1a0] sm:$0xff] }
  0x7c   : > { %1256 = vmatprep.subr.bf16.mxu1 %v1255_v30  ;;  %v308_v8 = vld [vmem:[%s1810_s4 + $0x1e8] sm:$0xff]  ;;  %v302_v9 = vld [vmem:[%s1810_s4 + $0x1b8] sm:$0xff]  ;;  %v307_v15 = vld [vmem:[%s1810_s4 + $0x1e0] sm:$0xff] }
  0x7d   : > { %v310_v10 = vld [vmem:[%s1810_s4 + $0x1f8] sm:$0xff]  ;;  %v1271_v13 = vpack.c.bf16 %v308_v8, %v300_v7  ;;  %v301_v16 = vld [vmem:[%s1810_s4 + $0x1b0] sm:$0xff]  ;;  %v316_v19 = vld [vmem:[%s1810_s4 + $0x228] sm:$0xff]  ;;  %v1273_v23 = vpack.c.bf16 %v307_v15, %v299_v14 }
  0x7e   : > { %1226 = vmatpush1.bf16.msra.mxu0 %v1225_v36  ;;  %v1303_v17 = vpack.c.bf16 %v310_v10, %v302_v9  ;;  %v309_v18 = vld [vmem:[%s1810_s4 + $0x1f0] sm:$0xff]  ;;  %v324_v20 = vld [vmem:[%s1810_s4 + $0x268] sm:$0xff]  ;;  %v318_v21 = vld [vmem:[%s1810_s4 + $0x238] sm:$0xff] }
  0x7f   : > { %1258 = vmatpush1.bf16.msra.mxu1 %v1257_v37  ;;  %1260 = vmatprep.subr.bf16.mxu0 %v1259_v38  ;;  %v326_v22 = vld [vmem:[%s1810_s4 + $0x278] sm:$0xff]  ;;  %v1305_v24 = vpack.c.bf16 %v309_v18, %v301_v16  ;;  %v1275_v25 = vpack.c.bf16 %v324_v20, %v316_v19  ;;  %v315_v26 = vld [vmem:[%s1810_s4 + $0x220] sm:$0xff]  ;;  %v317_v28 = vld [vmem:[%s1810_s4 + $0x230] sm:$0xff] }
  0x80   : > { %1292 = vmatprep.subr.bf16.mxu1 %v1291_v41  ;;  %v323_v27 = vld [vmem:[%s1810_s4 + $0x260] sm:$0xff]  ;;  %v1307_v29 = vpack.c.bf16 %v326_v22, %v318_v21  ;;  %v325_v30 = vld [vmem:[%s1810_s4 + $0x270] sm:$0xff]  ;;  %v332_v31 = vld [vmem:[%s1810_s4 + $0x2a8] sm:$0xff] }
  0x81   : > { %440 = vmatmul.mubr.f32.vlgmr.msra.gmra.mrb[0].mxu0 %v1892_v46  ;;  %v340_v32 = vld [vmem:[%s1810_s4 + $0x2e8] sm:$0xff]  ;;  %v334_v33 = vld [vmem:[%s1810_s4 + $0x2b8] sm:$0xff]  ;;  %v1277_v35 = vpack.c.bf16 %v323_v27, %v315_v26  ;;  %v1309_v36 = vpack.c.bf16 %v325_v30, %v317_v28  ;;  %v331_v38 = vld [vmem:[%s1810_s4 + $0x2a0] sm:$0xff]  ;;  %v835_v30 = vlaneseq }
  0x82   : > { %517 = vmatmul.mubr.f32.vlgmr.msra.gmra.mrb[0].mxu1 %v1892_v46  ;;  %1262 = vmatpush1.bf16.msra.mxu0 %v1261_v47  ;;  %v342_v34 = vld [vmem:[%s1810_s4 + $0x2f8] sm:$0xff]  ;;  %v1279_v37 = vpack.c.bf16 %v340_v32, %v332_v31  ;;  %v339_v39 = vld [vmem:[%s1810_s4 + $0x2e0] sm:$0xff]  ;;  %v333_v40 = vld [vmem:[%s1810_s4 + $0x2b0] sm:$0xff] }
  0x83   : > { %1294 = vmatpush1.bf16.msra.mxu1 %v1293_v50  ;;  %445 = vmatprep.mubr.f32.mxu0 %v1625_v0  ;;  %v1311_v41 = vpack.c.bf16 %v342_v34, %v334_v33  ;;  %v341_v42 = vld [vmem:[%s1810_s4 + $0x2f0] sm:$0xff]  ;;  %v348_v43 = vld [vmem:[%s1810_s4 + $0x328] sm:$0xff]  ;;  %v350_v45 = vld [vmem:[%s1810_s4 + $0x338] sm:$0xff]  ;;  %v1281_v48 = vpack.c.bf16 %v339_v39, %v331_v38 }
  0x84   : > { %522 = vmatprep.mubr.f32.mxu1 %v1625_v0  ;;  %1264 = vmatprep.subr.bf16.mxu0 %v1263_v54  ;;  %v356_v44 = vld [vmem:[%s1810_s4 + $0x368] sm:$0xff]  ;;  %v358_v47 = vld [vmem:[%s1810_s4 + $0x378] sm:$0xff]  ;;  %v1313_v49 = vpack.c.bf16 %v341_v42, %v333_v40  ;;  %v347_v51 = vld [vmem:[%s1810_s4 + $0x320] sm:$0xff] }
  0x85   : > { %446 = vmatmul.mubr.f32.gmra.mrb[2].mxu0 %v1906_v61  ;;  %1296 = vmatprep.subr.bf16.mxu1 %v1295_v58  ;;  %v1283_v50 = vpack.c.bf16 %v356_v44, %v348_v43  ;;  %v355_v52 = vld [vmem:[%s1810_s4 + $0x360] sm:$0xff]  ;;  %v349_v53 = vld [vmem:[%s1810_s4 + $0x330] sm:$0xff]  ;;  %v1315_v54 = vpack.c.bf16 %v358_v47, %v350_v45  ;;  %v364_v56 = vld [vmem:[%s1810_s4 + $0x3a8] sm:$0xff] }
  0x86   : > { %523 = vmatmul.mubr.f32.gmra.mrb[2].mxu1 %v1906_v61  ;;  %1266 = vmatpush1.bf16.msra.mxu0 %v1265_v62  ;;  %v357_v55 = vld [vmem:[%s1810_s4 + $0x370] sm:$0xff]  ;;  %v372_v57 = vld [vmem:[%s1810_s4 + $0x3e8] sm:$0xff]  ;;  %v366_v58 = vld [vmem:[%s1810_s4 + $0x3b8] sm:$0xff]  ;;  %v1285_v60 = vpack.c.bf16 %v355_v52, %v347_v51 }
  0x87   : > { %1298 = vmatpush1.bf16.msra.mxu1 %v1297_v63  ;;  %1268 = vmatprep.subr.bf16.mxu0 %v1267_v1  ;;  %v374_v59 = vld [vmem:[%s1810_s4 + $0x3f8] sm:$0xff]  ;;  %v1317_v62 = vpack.c.bf16 %v357_v55, %v349_v53  ;;  %v1287_v63 = vpack.c.bf16 %v372_v57, %v364_v56  ;;  %v363_v1 = vld [vmem:[%s1810_s4 + $0x3a0] sm:$0xff]  ;;  %v365_v4 = vld [vmem:[%s1810_s4 + $0x3b0] sm:$0xff] }
  0x88   : > { %1300 = vmatprep.subr.bf16.mxu1 %v1299_v5  ;;  %593 = vmatprep.mubr.f32.mxu0 %v1625_v0  ;;  %v371_v2 = vld [vmem:[%s1810_s4 + $0x3e0] sm:$0xff]  ;;  %v1319_v3 = vpack.c.bf16 %v374_v59, %v366_v58  ;;  %v373_v5 = vld [vmem:[%s1810_s4 + $0x3f0] sm:$0xff]  ;;  %s1504_s4 = scalar_lea.vmem %s1503_s9, 256 }
  0x89   : > { %670 = vmatprep.mubr.f32.mxu1 %v1625_v0  ;;  %v1289_v6 = vpack.c.bf16 %v371_v2, %v363_v1  ;;  %v1321_v7 = vpack.c.bf16 %v373_v5, %v365_v4  ;;  %p1506_p10 = scmp.lt.s32.totalorder %s1504_s4, %s1498_s7 }
  0x8a   : > { %1270 = vmatpush1.bf16.msra.mxu0 %v1269_v11 }
  0x8b   : > { %1302 = vmatpush1.bf16.msra.mxu1 %v1301_v12  ;;  %1272 = vmatprep.subr.bf16.mxu0 %v1271_v13  ;;  %p1507_p3 = por %p1506_p10, %p1505_p1 }
  0x8c   : > { %1304 = vmatprep.subr.bf16.mxu1 %v1303_v17 }
  0x8d   : > { %p1508_p6 = pnand %p1507_p3, %p1501_p4 }
  0x8e   : > { %1274 = vmatpush1.bf16.msra.mxu0 %v1273_v23 }
  0x8f   : > { %1306 = vmatpush1.bf16.msra.mxu1 %v1305_v24  ;;  %1276 = vmatprep.subr.bf16.mxu0 %v1275_v25  ;;  %v1626_v24 = vmov 1966171168  }
  0x90   : > { %1308 = vmatprep.subr.bf16.mxu1 %v1307_v29  ;;  %v1964_v25 = vunpack.c.l.s4 %v1626_v24 }
  0x92   : > { %1278 = vmatpush1.bf16.msra.mxu0 %v1277_v35  ;;  %v834_v53 = vunpack.c.0.s8 %v1964_v25 }
  0x93   : > { %1310 = vmatpush1.bf16.msra.mxu1 %v1309_v36  ;;  %1280 = vmatprep.subr.bf16.mxu0 %v1279_v37 }
  0x94   : > { %1312 = vmatprep.subr.bf16.mxu1 %v1311_v41 }
  0x96   : > { %1282 = vmatpush1.bf16.msra.mxu0 %v1281_v48 }
  0x97   : > { %1314 = vmatpush1.bf16.msra.mxu1 %v1313_v49  ;;  %1284 = vmatprep.subr.bf16.mxu0 %v1283_v50 }
  0x98   : > { %1316 = vmatprep.subr.bf16.mxu1 %v1315_v54  ;;  %v1967_v54 = vshrl.u32 %v835_v30, 7 }
  0x9a   : > { %1286 = vmatpush1.bf16.msra.mxu0 %v1285_v60 }
  0x9b   : > { %1318 = vmatpush1.bf16.msra.mxu1 %v1317_v62  ;;  %1288 = vmatprep.subr.bf16.mxu0 %v1287_v63 }
  0x9c   : > { %1320 = vmatprep.subr.bf16.mxu1 %v1319_v3 }
  0x9e   : > { %1290 = vmatpush1.bf16.msra.mxu0 %v1289_v6 }
  0x9f   : > { %1322 = vmatpush1.bf16.msra.mxu1 %v1321_v7 }
  0xa1   : > { %594 = vmatmul.mubr.f32.vlgmr.msra.gmra.mrb[4].mxu0 %v1892_v46 }
  0xa2   : > { %671 = vmatmul.mubr.f32.vlgmr.msra.gmra.mrb[4].mxu1 %v1892_v46  ;;  %599 = vmatprep.mubr.f32.mxu0 %v1625_v0 }
  0xa3   : > { %676 = vmatprep.mubr.f32.mxu1 %v1625_v0 }
  0xa5   : > { %600 = vmatmul.mubr.f32.gmra.mrb[6].mxu0 %v1906_v61 }
  0xa6   : > { %677 = vmatmul.mubr.f32.gmra.mrb[6].mxu1 %v1906_v61 }
 0x154   : > { %v441_v8 = vpop.f32.mrb[0].mxu0 }
 0x155   : > { %v699_v9 = vmul.f32 0.70710677, %v441_v8  ;;  %v518_v10 = vpop.f32.mrb[0].mxu1  ;;  %v443_v11 = vpop.f32.mrb[1].mxu0  ;;  %v683_v27 = vmul.f32 0.5, %v441_v8 }
 0x156   : > { %v701_v12 = vmul.f32 0.70710677, %v518_v10  ;;  %v700_v13 = vmul.f32 0.70710677, %v443_v11  ;;  %v520_v14 = vpop.f32.mrb[1].mxu1  ;;  %v685_v28 = vmul.f32 0.5, %v518_v10 }
 0x157   : > { %1408 = verf.f32 %v699_v9  ;;  %v702_v15 = vmul.f32 0.70710677, %v520_v14  ;;  %v684_v32 = vmul.f32 0.5, %v443_v11  ;;  %v686_v34 = vmul.f32 0.5, %v520_v14 }
 0x158   : > { %1410 = verf.f32 %v701_v12  ;;  %v447_v16 = vpop.f32.mrb[2].mxu0 }
 0x159   : > { %1412 = verf.f32 %v700_v13  ;;  %v707_v46 = vmul.f32 0.70710677, %v447_v16  ;;  %v524_v17 = vpop.f32.mrb[2].mxu1  ;;  %v449_v18 = vpop.f32.mrb[3].mxu0  ;;  %v691_v35 = vmul.f32 0.5, %v447_v16 }
 0x15a   : > { %1414 = verf.f32 %v702_v15  ;;  %v709_v0 = vmul.f32 0.70710677, %v524_v17  ;;  %v526_v19 = vpop.f32.mrb[3].mxu1  ;;  %v708_v61 = vmul.f32 0.70710677, %v449_v18  ;;  %v693_v40 = vmul.f32 0.5, %v524_v17 }
 0x15b   : > { %1416 = verf.f32 %v707_v46  ;;  %v710_v20 = vmul.f32 0.70710677, %v526_v19  ;;  %v692_v44 = vmul.f32 0.5, %v449_v18  ;;  %v694_v49 = vmul.f32 0.5, %v526_v19 }
 0x15c   : > { %1418 = verf.f32 %v709_v0 }
 0x15d   : > { %1420 = verf.f32 %v708_v61 }
 0x15e   : > { %1422 = verf.f32 %v710_v20 }
 0x161   : > { %v1409_v21 = vpop.eup %1408 }
 0x162   : > { %v1411_v22 = vpop.eup %1410  ;;  %v731_v23 = vadd.f32 1.0, %v1409_v21 }
 0x163   : > { %v1413_v26 = vpop.eup %1412  ;;  %v733_v29 = vadd.f32 1.0, %v1411_v22 }
 0x164   : > { %v1415_v31 = vpop.eup %1414  ;;  %v732_v33 = vadd.f32 1.0, %v1413_v26  ;;  %v747_v37 = vmul.f32 %v731_v23, %v683_v27 }
 0x165   : > { %v1417_v36 = vpop.eup %1416  ;;  %v749_v38 = vmul.f32 %v733_v29, %v685_v28  ;;  %v734_v39 = vadd.f32 1.0, %v1415_v31 }
 0x166   : > { %v1419_v41 = vpop.eup %1418  ;;  %v748_v42 = vmul.f32 %v732_v33, %v684_v32  ;;  %v739_v43 = vadd.f32 1.0, %v1417_v36  ;;  %v881_v55 = vmul.f32 %v747_v37, %v747_v37 }
 0x167   : > { %v1421_v45 = vpop.eup %1420  ;;  %v750_v47 = vmul.f32 %v734_v39, %v686_v34  ;;  %v741_v48 = vadd.f32 1.0, %v1419_v41  ;;  %v883_v56 = vmul.f32 %v749_v38, %v749_v38 }
 0x168   : > { %v1423_v50 = vpop.eup %1422  ;;  %v755_v51 = vmul.f32 %v739_v43, %v691_v35  ;;  %v740_v52 = vadd.f32 1.0, %v1421_v45  ;;  %v882_v59 = vmul.f32 %v748_v42, %v748_v42 }
 0x169   : > { %v757_v57 = vmul.f32 %v741_v48, %v693_v40  ;;  %v742_v58 = vadd.f32 1.0, %v1423_v50  ;;  %v884_v1 = vmul.f32 %v750_v47, %v750_v47 }
 0x16a   : > { %v764_v60 = vadd.f32 %v755_v51, %v747_v37  ;;  %v889_v62 = vmul.f32 %v755_v51, %v755_v51  ;;  %v756_v63 = vmul.f32 %v740_v52, %v692_v44 }
 0x16b   : > { %v778_v2 = vadd.f32 %v757_v57, %v749_v38  ;;  %v891_v3 = vmul.f32 %v757_v57, %v757_v57  ;;  %v758_v4 = vmul.f32 %v742_v58, %v694_v49 }
 0x16c   : > { %v765_v5 = vrot.slane %v764_v60, 4  ;;  %v897_v6 = vadd.f32 %v889_v62, %v881_v55  ;;  %v771_v7 = vadd.f32 %v756_v63, %v748_v42  ;;  %v890_v8 = vmul.f32 %v756_v63, %v756_v63 }
 0x16d   : > { %v779_v9 = vrot.slane %v778_v2, 4  ;;  %v911_v10 = vadd.f32 %v891_v3, %v883_v56  ;;  %v785_v11 = vadd.f32 %v758_v4, %v750_v47  ;;  %v892_v12 = vmul.f32 %v758_v4, %v758_v4 }
 0x16e   : > { %v766_v13 = vadd.f32 %v765_v5, %v764_v60  ;;  %v898_v14 = vrot.slane %v897_v6, 4  ;;  %v772_v15 = vrot.slane %v771_v7, 4  ;;  %v904_v16 = vadd.f32 %v890_v8, %v882_v59 }
 0x16f   : > { %v780_v46 = vadd.f32 %v779_v9, %v778_v2  ;;  %v912_v17 = vrot.slane %v911_v10, 4  ;;  %v786_v18 = vrot.slane %v785_v11, 4  ;;  %v918_v0 = vadd.f32 %v892_v12, %v884_v1 }
 0x170   : > { %v767_v19 = vrot.slane %v766_v13, 2  ;;  %v899_v61 = vadd.f32 %v898_v14, %v897_v6  ;;  %v773_v20 = vadd.f32 %v772_v15, %v771_v7  ;;  %v905_v21 = vrot.slane %v904_v16, 4 }
 0x171   : > { %v781_v22 = vrot.slane %v780_v46, 2  ;;  %v913_v23 = vadd.f32 %v912_v17, %v911_v10  ;;  %v787_v24 = vadd.f32 %v786_v18, %v785_v11  ;;  %v919_v26 = vrot.slane %v918_v0, 4 }
 0x172   : > { %v768_v27 = vadd.f32 %v767_v19, %v766_v13  ;;  %v900_v28 = vrot.slane %v899_v61, 2  ;;  %v774_v29 = vrot.slane %v773_v20, 2  ;;  %v906_v30 = vadd.f32 %v905_v21, %v904_v16 }
 0x173   : > { %v782_v31 = vadd.f32 %v781_v22, %v780_v46  ;;  %v914_v32 = vrot.slane %v913_v23, 2  ;;  %v788_v33 = vrot.slane %v787_v24, 2  ;;  %v920_v34 = vadd.f32 %v919_v26, %v918_v0 }
 0x174   : > { %v769_v35 = vrot.slane %v768_v27, 1  ;;  %v901_v36 = vadd.f32 %v900_v28, %v899_v61  ;;  %v775_v37 = vadd.f32 %v774_v29, %v773_v20  ;;  %v907_v38 = vrot.slane %v906_v30, 2  ;;  %v595_v39 = vpop.f32.mrb[4].mxu0 }
 0x175   : > { %v783_v40 = vrot.slane %v782_v31, 1  ;;  %v915_v41 = vadd.f32 %v914_v32, %v913_v23  ;;  %v789_v42 = vadd.f32 %v788_v33, %v787_v24  ;;  %v921_v43 = vrot.slane %v920_v34, 2  ;;  %v672_v44 = vpop.f32.mrb[4].mxu1  ;;  %v597_v45 = vpop.f32.mrb[5].mxu0 }
 0x176   : > { %v770_v47 = vadd.f32 %v769_v35, %v768_v27  ;;  %v902_v48 = vrot.slane %v901_v36, 1  ;;  %v776_v49 = vrot.slane %v775_v37, 1  ;;  %v908_v50 = vadd.f32 %v907_v38, %v906_v30  ;;  %v674_v51 = vpop.f32.mrb[5].mxu1 }
 0x177   : > { %v784_v52 = vadd.f32 %v783_v40, %v782_v31  ;;  %v916_v55 = vrot.slane %v915_v41, 1  ;;  %v790_v56 = vrot.slane %v789_v42, 1  ;;  %v922_v57 = vadd.f32 %v921_v43, %v920_v34 }
 0x178   : > { %v903_v58 = vadd.f32 %v902_v48, %v901_v36  ;;  %v777_v59 = vadd.f32 %v776_v49, %v775_v37  ;;  %v1972_v60 = vsub.s32 %v834_v53, %v1967_v54  ;;  %v909_v62 = vrot.slane %v908_v50, 1  ;;  %v601_v63 = vpop.f32.mrb[6].mxu0 }
 0x179   : > { %v917_v1 = vadd.f32 %v916_v55, %v915_v41  ;;  %v791_v2 = vadd.f32 %v790_v56, %v789_v42  ;;  %v923_v3 = vrot.slane %v922_v57, 1  ;;  %v703_v4 = vmul.f32 0.70710677, %v595_v39  ;;  %v678_v5 = vpop.f32.mrb[6].mxu1  ;;  %v603_v6 = vpop.f32.mrb[7].mxu0 }
 0x17a   : > { %v828_v7 = vcombine.low %v770_v47, %v777_v59  ;;  %v910_v8 = vadd.f32 %v909_v62, %v908_v50  ;;  %v705_v9 = vmul.f32 0.70710677, %v672_v44  ;;  %v680_v10 = vpop.f32.mrb[7].mxu1  ;;  %v704_v53 = vmul.f32 0.70710677, %v597_v45 }
 0x17b   : > { %v829_v11 = vcombine.low %v784_v52, %v791_v2  ;;  %v924_v12 = vadd.f32 %v923_v3, %v922_v57  ;;  %1424 = verf.f32 %v703_v4  ;;  %v706_v15 = vmul.f32 0.70710677, %v674_v51 }
 0x17c   : > { %v1975_v13 = vrot.slane %v828_v7, %v1972_v60  ;;  %v961_v25 = vcombine.low %v903_v58, %v910_v8  ;;  %1426 = verf.f32 %v705_v9  ;;  %v711_v46 = vmul.f32 0.70710677, %v601_v63 }
 0x17d   : > { %v1978_v54 = vrot.slane %v829_v11, %v1972_v60  ;;  %v962_v14 = vcombine.low %v917_v1, %v924_v12  ;;  %1428 = verf.f32 %v704_v53  ;;  %v713_v0 = vmul.f32 0.70710677, %v678_v5 }
 0x17e   : > { %v1981_v16 = vrot.slane %v961_v25, %v1972_v60  ;;  %1430 = verf.f32 %v706_v15  ;;  %v712_v19 = vmul.f32 0.70710677, %v603_v6  ;;  %v714_v61 = vmul.f32 0.70710677, %v680_v10 }
 0x17f   : > { %v860_v17 = vcombine.low %v1975_v13, %v1978_v54  ;;  %v1986_v18 = vrot.slane %v962_v14, %v1972_v60  ;;  %1432 = verf.f32 %v711_v46  ;;  %v687_v26 = vmul.f32 0.5, %v595_v39 }
 0x180   : > { %1434 = verf.f32 %v713_v0  ;;  %v689_v32 = vmul.f32 0.5, %v672_v44  ;;  %v688_v33 = vmul.f32 0.5, %v597_v45  ;;  %v695_v35 = vmul.f32 0.5, %v601_v63 }
 0x181   : > { %v993_v20 = vcombine.low %v1981_v16, %v1986_v18  ;;  %1436 = verf.f32 %v712_v19  ;;  %v690_v41 = vmul.f32 0.5, %v674_v51  ;;  %v697_v47 = vmul.f32 0.5, %v678_v5 }
 0x182   : > { %1438 = verf.f32 %v714_v61  ;;  %v696_v52 = vmul.f32 0.5, %v603_v6  ;;  %v698_v63 = vmul.f32 0.5, %v680_v10 }
 0x185   : > { %v1425_v21 = vpop.eup %1424 }
 0x186   : > { %v1427_v22 = vpop.eup %1426  ;;  %v735_v23 = vadd.f32 1.0, %v1425_v21 }
 0x187   : > { %v1429_v24 = vpop.eup %1428  ;;  %v737_v27 = vadd.f32 1.0, %v1427_v22 }
 0x188   : > { %v1431_v28 = vpop.eup %1430  ;;  %v736_v29 = vadd.f32 1.0, %v1429_v24  ;;  %v751_v31 = vmul.f32 %v735_v23, %v687_v26 }
 0x189   : > { %v1433_v30 = vpop.eup %1432  ;;  %v738_v34 = vadd.f32 1.0, %v1431_v28  ;;  %v753_v38 = vmul.f32 %v737_v27, %v689_v32 }
 0x18a   : > { %v743_v36 = vadd.f32 1.0, %v1433_v30  ;;  %v1435_v37 = vpop.eup %1434  ;;  %v752_v40 = vmul.f32 %v736_v29, %v688_v33  ;;  %v885_v39 = vmul.f32 %v751_v31, %v751_v31 }
 0x18b   : > { %v1437_v42 = vpop.eup %1436  ;;  %v745_v48 = vadd.f32 1.0, %v1435_v37  ;;  %v754_v50 = vmul.f32 %v738_v34, %v690_v41  ;;  %v887_v58 = vmul.f32 %v753_v38, %v753_v38 }
 0x18c   : > { %v759_v43 = vmul.f32 %v743_v36, %v695_v35  ;;  %v1439_v49 = vpop.eup %1438  ;;  %v744_v55 = vadd.f32 1.0, %v1437_v42  ;;  %v886_v59 = vmul.f32 %v752_v40, %v752_v40 }
 0x18d   : > { %v761_v44 = vmul.f32 %v745_v48, %v697_v47  ;;  %v746_v45 = vadd.f32 1.0, %v1439_v49  ;;  %v888_v4 = vmul.f32 %v754_v50, %v754_v50 }
 0x18e   : > { %v792_v56 = vadd.f32 %v759_v43, %v751_v31  ;;  %v893_v57 = vmul.f32 %v759_v43, %v759_v43  ;;  %v760_v62 = vmul.f32 %v744_v55, %v696_v52 }
 0x18f   : > { %v806_v51 = vadd.f32 %v761_v44, %v753_v38  ;;  %v895_v3 = vmul.f32 %v761_v44, %v761_v44  ;;  %v762_v8 = vmul.f32 %v746_v45, %v698_v63 }
 0x190   : > { %v793_v1 = vrot.slane %v792_v56, 4  ;;  %v925_v2 = vadd.f32 %v893_v57, %v885_v39  ;;  %v799_v5 = vadd.f32 %v760_v62, %v752_v40  ;;  %v894_v7 = vmul.f32 %v760_v62, %v760_v62 }
 0x191   : > { %v807_v6 = vrot.slane %v806_v51, 4  ;;  %v939_v12 = vadd.f32 %v895_v3, %v887_v58  ;;  %v813_v14 = vadd.f32 %v762_v8, %v754_v50  ;;  %v896_v15 = vmul.f32 %v762_v8, %v762_v8 }
 0x192   : > { %v794_v9 = vadd.f32 %v793_v1, %v792_v56  ;;  %v926_v11 = vrot.slane %v925_v2, 4  ;;  %v800_v25 = vrot.slane %v799_v5, 4  ;;  %v932_v53 = vadd.f32 %v894_v7, %v886_v59 }
 0x193   : > { %v808_v19 = vadd.f32 %v807_v6, %v806_v51  ;;  %v940_v10 = vrot.slane %v939_v12, 4  ;;  %v814_v22 = vrot.slane %v813_v14, 4  ;;  %v946_v23 = vadd.f32 %v896_v15, %v888_v4 }
 0x194   : > { %v795_v46 = vrot.slane %v794_v9, 2  ;;  %v927_v0 = vadd.f32 %v926_v11, %v925_v2  ;;  %v801_v61 = vadd.f32 %v800_v25, %v799_v5  ;;  %v933_v21 = vrot.slane %v932_v53, 4 }
 0x195   : > { %v809_v27 = vrot.slane %v808_v19, 2  ;;  %v941_v28 = vadd.f32 %v940_v10, %v939_v12  ;;  %v815_v31 = vadd.f32 %v814_v22, %v813_v14  ;;  %v947_v32 = vrot.slane %v946_v23, 4 }
 0x196   : > { %v796_v24 = vadd.f32 %v795_v46, %v794_v9  ;;  %v928_v26 = vrot.slane %v927_v0, 2  ;;  %v802_v29 = vrot.slane %v801_v61, 2  ;;  %v934_v30 = vadd.f32 %v933_v21, %v932_v53 }
 0x197   : > { %v810_v35 = vadd.f32 %v809_v27, %v808_v19  ;;  %v942_v36 = vrot.slane %v941_v28, 2  ;;  %v816_v40 = vrot.slane %v815_v31, 2  ;;  %v948_v41 = vadd.f32 %v947_v32, %v946_v23 }
 0x198   : > { %v797_v33 = vrot.slane %v796_v24, 1  ;;  %v929_v34 = vadd.f32 %v928_v26, %v927_v0  ;;  %v803_v37 = vadd.f32 %v802_v29, %v801_v61  ;;  %v935_v38 = vrot.slane %v934_v30, 2 }
 0x199   : > { %v811_v47 = vrot.slane %v810_v35, 1  ;;  %v943_v48 = vadd.f32 %v942_v36, %v941_v28  ;;  %v817_v50 = vadd.f32 %v816_v40, %v815_v31  ;;  %v949_v52 = vrot.slane %v948_v41, 2 }
 0x19a   : > { %v798_v42 = vadd.f32 %v797_v33, %v796_v24  ;;  %v930_v43 = vrot.slane %v929_v34, 1  ;;  %v804_v49 = vrot.slane %v803_v37, 1  ;;  %v936_v39 = vadd.f32 %v935_v38, %v934_v30 }
 0x19b   : > { %v812_v56 = vadd.f32 %v811_v47, %v810_v35  ;;  %v944_v57 = vrot.slane %v943_v48, 1  ;;  %v818_v58 = vrot.slane %v817_v50, 1  ;;  %v950_v59 = vadd.f32 %v949_v52, %v948_v41 }
 0x19c   : > { %v931_v55 = vadd.f32 %v930_v43, %v929_v34  ;;  %v805_v44 = vadd.f32 %v804_v49, %v803_v37  ;;  %v937_v45 = vrot.slane %v936_v39, 1  ;;  %v868_v53 = vrot.slane %v860_v17, %v1972_v60 }
 0x19d   : > { %v945_v62 = vadd.f32 %v944_v57, %v943_v48  ;;  %v819_v2 = vadd.f32 %v818_v58, %v817_v50  ;;  %v951_v51 = vrot.slane %v950_v59, 1  ;;  %v1001_v46 = vrot.slane %v993_v20, %v1972_v60 }
 0x19e   : > { %v830_v63 = vcombine.low %v798_v42, %v805_v44  ;;  %v938_v1 = vadd.f32 %v937_v45, %v936_v39 }
 0x19f   : > { %v831_v5 = vcombine.low %v812_v56, %v819_v2  ;;  %v952_v7 = vadd.f32 %v951_v51, %v950_v59 }
 0x1a0   : > { %v852_v3 = vrot.slane %v830_v63, %v1972_v60  ;;  %v963_v4 = vcombine.low %v931_v55, %v938_v1 }
 0x1a1   : > { %v859_v9 = vrot.slane %v831_v5, %v1972_v60  ;;  %v964_v11 = vcombine.low %v945_v62, %v952_v7 }
 0x1a2   : > { %v985_v8 = vrot.slane %v963_v4, %v1972_v60 }
 0x1a3   : > { %v861_v6 = vcombine.low %v852_v3, %v859_v9  ;;  %v992_v12 = vrot.slane %v964_v11, %v1972_v60 }
 0x1a5   : > { %v994_v25 = vcombine.low %v985_v8, %v992_v12  ;;  %v875_v14 = vrot.slane %v861_v6, %v1972_v60 }
 0x1a7   : > { %v876_v15 = vcombine.low %v868_v53, %v875_v14  ;;  %v1008_v0 = vrot.slane %v994_v25, %v1972_v60 }
 0x1a9   : > { %v1009_v13 = vcombine.low %v1001_v46, %v1008_v0  ;;  %879 = vst [vmem:[%s227_s25] sm:$0xff] %v876_v15 }
 0x1aa   : > { %1511 = shalt.err (!%p1508_p6)
}
 0x1ab   : > { %s1512_s20 = scalar_lea.hbm %s2012_s10, 128  ;;  %s1516_s19 = scalar_lea.hbm %s2093_s2, 256 }
 0x1ac   : > { %p1513_p0 = scmp.ne.s32.totalorder %s2012_s10, %s1512_s20  ;;  %p1517_p12 = scmp.lt.u32.totalorder %s2012_s10, %s2093_s2 }
 0x1ad   : > { %p1518_p5 = scmp.lt.u32.totalorder %s1516_s19, %s1512_s20  ;;  %p1520_p9 = scmp.lt.u32.totalorder %s1512_s20, %s2012_s10 }
 0x1ae   : > { %p1514_p2 = pnand %p1513_p0, %p2113_p11 }
 0x1af   : > { %p1519_p8 = por %p1518_p5, %p1517_p12 }
 0x1b0   : > { %p1515_p7 = pneg %p1514_p2 }
 0x1b1   : > { %p1521_p13 = por %p1520_p9, %p1519_p8 }
 0x1b3   : > { %p1522_p4 = pnand %p1521_p13, %p1515_p7 }
 0x1b5   : > { %1525 = shalt.err (!%p1522_p4)
}
 0x1b6   : > { %1329 = dma.vmem_to_hbm [thread:$0]  (%p2113_p11), %s2014_s29, 128, %s2012_s10, %s1014_s26   ;;  %1012 = vst [vmem:[%s2006_s28] sm:$0xff] %v1009_v13 }
 0x1b7   : > { %s1019_s27 = scalar_lea.sflag [#allocation9], %s1806_s8  ;;  %s1526_s7 = scalar_lea.vmem %s2021_s11, 128 }
 0x1b8   : > { %p1527_p1 = scmp.ne.s32.totalorder %s2021_s11, %s1526_s7  ;;  %s1628_s6 = smov [#allocation8]  }
 0x1b9   : > { %s1530_s9 = sshll.u32 %s1628_s6, 4  ;;  %s1531_s9 = int_to_ptr.vmem [resolvable:$false] %s1530_s9 }
 0x1ba   : > { %p1528_p10 = pnand %p1527_p1, %p2113_p11  ;;  %s1532_s4 = scalar_lea.vmem %s1531_s9, 256 }
 0x1bb   : > { %p1533_p6 = scmp.lt.s32.totalorder %s2021_s11, %s1531_s9  ;;  %p1534_p0 = scmp.lt.s32.totalorder %s1532_s4, %s1526_s7 }
 0x1bc   : > { %p1529_p3 = pneg %p1528_p10 }
 0x1bd   : > { %p1535_p2 = por %p1534_p0, %p1533_p6 }
 0x1bf   : > { %p1536_p7 = pnand %p1535_p2, %p1529_p3 }
 0x1c1   : > { %1539 = shalt.err (!%p1536_p7)
}
 0x1c2   : > { %s1540_s8 = scalar_lea.hbm %s2019_s21, 128  ;;  %s1544_s10 = scalar_lea.hbm %s2094_s3, 256 }
 0x1c3   : > { %p1541_p12 = scmp.ne.s32.totalorder %s2019_s21, %s1540_s8  ;;  %p1545_p9 = scmp.lt.u32.totalorder %s2019_s21, %s2094_s3 }
 0x1c4   : > { %p1546_p13 = scmp.lt.u32.totalorder %s1544_s10, %s1540_s8  ;;  %p1548_p1 = scmp.lt.u32.totalorder %s1540_s8, %s2019_s21 }
 0x1c5   : > { %p1542_p5 = pnand %p1541_p12, %p2113_p11 }
 0x1c6   : > { %p1547_p4 = por %p1546_p13, %p1545_p9 }
 0x1c7   : > { %p1543_p8 = pneg %p1542_p5 }
 0x1c8   : > { %p1549_p10 = por %p1548_p1, %p1547_p4 }
 0x1ca   : > { %p1550_p3 = pnand %p1549_p10, %p1543_p8 }
 0x1cc   : > { %1553 = shalt.err (!%p1550_p3)
}
 0x1cd   : > { %1330 = dma.vmem_to_hbm [thread:$0]  (%p2113_p11), %s2021_s11, 128, %s2019_s21, %s1019_s27  }
 0x1ce PF: > { %s1059_s22 = sand.u32 1, %s1596_s12   ;;  %p2114_p6 = scmp.ne.s32.totalorder %s2105_s24, 0 }
 0x1cf   : > { %p2115_p0 = scmp.ge.s32.totalorder %s1616_s17, 2  ;;  %s1060_s25 = scalar_lea.sflag [#allocation4], %s1059_s22 }
 0x1d1   : > { %p1342_p2 = pnand %p2115_p0, %p2114_p6 }
 0x1d3   : > { %1587 = dma.done.wait (!%p1342_p2), %s1060_s25, 128  }
 0x1d4   : > { %1589 = vsyncadd (!%p1342_p2), %s1060_s25, 4294967168  ;;  %s1069_s19 = scalar_lea.sflag [#allocation9], %s1059_s22 }
 0x1d5   : > { %1591 = dma.done.wait (!%p1342_p2), %s1069_s19, 128  }
 0x1d6   : > { %1593 = vsyncadd (!%p1342_p2), %s1069_s19, 4294967168  ;;  %s24_s17 = sadd.s32 1, %s1616_s17   ;;  %s2116_s12 = smov %s1600_s13 }
 0x1d7   : > { %p21_p7 = scmp.ge.s32.totalorder %s24_s17, 4   ;;  %s2117_s13 = smov %s1604_s14 }
 0x1d8   : > { %s2118_s14 = smov %s1767_s18  ;;  %s2119_s15 = smov %s1612_s16 }
 0x1d9   : > { %s2120_s16 = smov %s2122_s30  ;;  %23 = sbr.rel (!%p21_p7) target bundleno = 9 (0x9), region = 100 }
 0x1e0   :  { %1074 = vsyncpa [#allocation3], 1 }
 0x1e1   :  { %1076 = vsyncpa [#allocation3 + $0x1], 1 }
 0x1e2   :  { %1077 = vsyncpa [#allocation6], 1 }
 0x1e3   :  { %1079 = vsyncpa [#allocation6 + $0x1], 1 }
 0x1e4   :  { %1080 = vsyncpa [#allocation4], 1 }
 0x1e5   :  { %1082 = vsyncpa [#allocation4 + $0x1], 1 }
 0x1e6   :  { %1083 = vsyncpa [#allocation9], 1 }
 0x1e7   :  { %1085 = vsyncpa [#allocation9 + $0x1], 1 }

</bundles_post_ra>
